<compile_context>
chip_gen: v6e
topology: v6e:2x2x1
jax: 0.10.0
libtpu: 0.0.40
codegen_flags: <defaults>
</compile_context>

<pallas_src>
import jax
import jax.numpy as jnp
from jax import lax
from jax.experimental import pallas as pl
from jax.experimental.pallas import tpu as pltpu


def _round_up(a: int, b: int) -> int:
    return ((a + b - 1) // b) * b


def mlp_kernel(x_ref, w1t_ref, b1_ref, w2t_ref, b2_ref, w3t_ref, b3_ref, ot_ref):
    # x tile: (TB, D) f32 -> cast to bf16 on the VPU (no wrapper pass over x).
    x = x_ref[...].astype(jnp.bfloat16)                      # (TB, D)

    # Layer 1: (128, D) . (TB, D)^T -> (128, TB).  "A @ B^T" (q@k.T) form:
    # contraction over D, batch lands on the lane/N axis of the MXU.
    h1t = lax.dot_general(
        w1t_ref[...], x,
        dimension_numbers=(((1,), (1,)), ((), ())),
        preferred_element_type=jnp.float32,
    ) + b1_ref[...]                                          # bias (128, 1) bcast over lanes
    h1t = jnp.maximum(h1t, 0.0)                              # ReLU (f32)

    # Layer 2: (16, 128) @ (128, TB) -> (16, TB), bf16 operands, f32 acc.
    h2t = jnp.dot(w2t_ref[...], h1t.astype(jnp.bfloat16),
                  preferred_element_type=jnp.float32) + b2_ref[...]
    h2t = jnp.maximum(h2t, 0.0)                              # ReLU (f32)

    # Layer 3: (2, 16) @ (16, TB) -> (2, TB), bf16 operands, f32 acc.
    h3t = jnp.dot(w3t_ref[...], h2t.astype(jnp.bfloat16),
                  preferred_element_type=jnp.float32) + b3_ref[...]

    # Output is already lane-dense (batch on lanes): store directly.
    ot_ref[...] = jnp.tanh(h3t).astype(ot_ref.dtype)


def neural_model_forward(x, params, *, block_b: int = 8192):
    """x: [B, D] float32.  params: w{1,2,3} as [in, out], b{1,2,3} as [1, out]."""
    B, D = x.shape
    w1, b1, w2, b2, w3, b3 = (params[k] for k in ("w1", "b1", "w2", "b2", "w3", "b3"))
    H1, H2, OUT = w1.shape[1], w2.shape[1], w3.shape[1]

    # Pre-transpose the tiny weights for the batch-on-lanes formulation and
    # cast to bf16; biases become column vectors that broadcast across lanes.
    # (These arrays total <10 KB, so this wrapper work is negligible.)
    w1t = w1.T.astype(jnp.bfloat16)                 # (H1, D)
    w2t = w2.T.astype(jnp.bfloat16)                 # (H2, H1)
    w3t = w3.T.astype(jnp.bfloat16)                 # (OUT, H2)
    b1t = jnp.reshape(b1, (H1, 1)).astype(jnp.float32)
    b2t = jnp.reshape(b2, (H2, 1)).astype(jnp.float32)
    b3t = jnp.reshape(b3, (OUT, 1)).astype(jnp.float32)

    # --- Batch tile selection -------------------------------------------------
    # Minimize tail-padding waste and keep >= 2 grid steps for large B so the
    # "parallel" axis can split across v7x's two TensorCores.
    n_tiles = max(1, -(-B // block_b))
    if n_tiles == 1 and B > 256:
        n_tiles = 2
    tb = _round_up(-(-B // n_tiles), 128)           # lane-axis tile, multiple of 128
    grid = (pl.cdiv(B, tb),)
    b_total = grid[0] * tb                          # rows actually pushed through MXU

    small_ops = (w1t, b1t, w2t, b2t, w3t, b3t)
    weight_bytes = sum(int(a.size) * a.dtype.itemsize for a in small_ops)
    cost = pl.CostEstimate(
        flops=2 * b_total * (D * H1 + H1 * H2 + H2 * OUT),
        transcendentals=b_total * OUT,                        # tanh
        bytes_accessed=B * D * 4 + B * OUT * 4 + weight_bytes,
    )

    def full_block(a):
        # Full-array block, same block every grid step -> stays VMEM-resident.
        return pl.BlockSpec(a.shape, lambda i: (0, 0))

    out_t = pl.pallas_call(
        mlp_kernel,
        out_shape=jax.ShapeDtypeStruct((OUT, B), jnp.float32),
        grid=grid,
        in_specs=[
            pl.BlockSpec((tb, D), lambda i: (i, 0)),          # x streamed by batch tile
            full_block(w1t), full_block(b1t),
            full_block(w2t), full_block(b2t),
            full_block(w3t), full_block(b3t),
        ],
        out_specs=pl.BlockSpec((OUT, tb), lambda i: (0, i)),  # lane-dense (2, TB) tile
        compiler_params=pltpu.CompilerParams(
            dimension_semantics=("parallel",),                # megacore split on v7x
            vmem_limit_bytes=32 * 1024 * 1024,                # safe on v5e/v6e/v7x
        ),
        cost_estimate=cost,
    )(x, w1t, b1t, w2t, b2t, w3t, b3t)

    return out_t.T                                            # (B, OUT)


def init_params(key, in_features):
    """Mimics PyTorch nn.Linear default init: U(-1/sqrt(fan_in), 1/sqrt(fan_in))."""
    dims = [(in_features, 128), (128, 16), (16, 2)]
    params = {}
    keys = jax.random.split(key, 2 * len(dims))
    for i, (fan_in, fan_out) in enumerate(dims):
        bound = 1.0 / jnp.sqrt(jnp.float32(fan_in))
        params[f"w{i+1}"] = jax.random.uniform(
            keys[2 * i], (fan_in, fan_out), jnp.float32, -bound, bound)
        params[f"b{i+1}"] = jax.random.uniform(
            keys[2 * i + 1], (1, fan_out), jnp.float32, -bound, bound)
    return params


def reference_forward_f32(x, p):
    """Pure f32 reference (matches the PyTorch module's math)."""
    hp = jax.lax.Precision.HIGHEST
    h1 = jnp.maximum(jnp.dot(x, p["w1"], precision=hp) + p["b1"], 0.0)
    h2 = jnp.maximum(jnp.dot(h1, p["w2"], precision=hp) + p["b2"], 0.0)
    return jnp.tanh(jnp.dot(h2, p["w3"], precision=hp) + p["b3"])


def reference_forward_bf16_mirror(x, p):
    """Reference mirroring the kernel's bf16 matmuls with f32 accumulation."""
    bf = jnp.bfloat16
    h1 = jnp.dot(x.astype(bf), p["w1"].astype(bf),
                 preferred_element_type=jnp.float32) + p["b1"]
    h1 = jnp.maximum(h1, 0.0)
    h2 = jnp.dot(h1.astype(bf), p["w2"].astype(bf),
                 preferred_element_type=jnp.float32) + p["b2"]
    h2 = jnp.maximum(h2, 0.0)
    h3 = jnp.dot(h2.astype(bf), p["w3"].astype(bf),
                 preferred_element_type=jnp.float32) + p["b3"]
    return jnp.tanh(h3)


if __name__ == "__main__":
    key = jax.random.PRNGKey(0)
    k_x, k_p = jax.random.split(key)

    B, D = 8, 32                      # small shapes consistent with the module
    x = jax.random.normal(k_x, (B, D), jnp.float32)
    params = init_params(k_p, D)

    out = neural_model_forward(x, params)
    out = jax.block_until_ready(out)

    ref_mirror = reference_forward_bf16_mirror(x, params)
    ref_f32 = reference_forward_f32(x, params)

    assert out.shape == (B, 2), out.shape
    assert jnp.allclose(out, ref_mirror, atol=1e-2, rtol=1e-2), \
        "mismatch vs bf16-matmul reference"
    assert jnp.allclose(out, ref_f32, atol=3e-2, rtol=3e-2), \
        "mismatch vs f32 reference"

    print("KERNEL_OK")
</pallas_src>

<mosaic_0001>
module attributes {stable_mosaic.version = 11 : i64} {
  func.func @mlp_kernel(%arg0: i32, %arg1: memref<128x32xf32, #tpu.memory_space<vmem>>, %arg2: memref<128x32xbf16, #tpu.memory_space<vmem>>, %arg3: memref<128x1xf32, #tpu.memory_space<vmem>>, %arg4: memref<16x128xbf16, #tpu.memory_space<vmem>>, %arg5: memref<16x1xf32, #tpu.memory_space<vmem>>, %arg6: memref<2x16xbf16, #tpu.memory_space<vmem>>, %arg7: memref<2x1xf32, #tpu.memory_space<vmem>>, %arg8: memref<2x128xf32, #tpu.memory_space<vmem>>) attributes {dimension_semantics = [#tpu.dimension_semantics<parallel>], iteration_bounds = array<i64: 1>, scalar_prefetch = 0 : i64, scratch_operands = 0 : i64, tpu.core_type = #tpu.core_type<tc>, window_params = [{transform_indices = @transform_0, window_bounds = array<i64: 128, 32>}, {pipeline_mode = #tpu.pipeline_mode<synchronous>, transform_indices = @transform_1, window_bounds = array<i64: 128, 32>}, {pipeline_mode = #tpu.pipeline_mode<synchronous>, transform_indices = @transform_2, window_bounds = array<i64: 128, 1>}, {pipeline_mode = #tpu.pipeline_mode<synchronous>, transform_indices = @transform_3, window_bounds = array<i64: 16, 128>}, {pipeline_mode = #tpu.pipeline_mode<synchronous>, transform_indices = @transform_4, window_bounds = array<i64: 16, 1>}, {pipeline_mode = #tpu.pipeline_mode<synchronous>, transform_indices = @transform_5, window_bounds = array<i64: 2, 16>}, {pipeline_mode = #tpu.pipeline_mode<synchronous>, transform_indices = @transform_6, window_bounds = array<i64: 2, 1>}, {transform_indices = @transform_7, window_bounds = array<i64: 2, 128>}]} {
    %c0 = arith.constant 0 : index
    %c0_0 = arith.constant 0 : index
    %0 = vector.load %arg1[%c0, %c0_0] : memref<128x32xf32, #tpu.memory_space<vmem>>, vector<128x32xf32>
    %1 = arith.truncf %0 : vector<128x32xf32> to vector<128x32xbf16>
    %c0_1 = arith.constant 0 : index
    %c0_2 = arith.constant 0 : index
    %2 = vector.load %arg2[%c0_1, %c0_2] : memref<128x32xbf16, #tpu.memory_space<vmem>>, vector<128x32xbf16>
    %cst = arith.constant dense<0.000000e+00> : vector<128x128xf32>
    %3 = tpu.matmul %2, %1, %cst {dimension_numbers = #tpu.dot_dimension_numbers<[1], [1], [0], [0], [0, 0, 1, 0], [], []>} : vector<128x32xbf16>, vector<128x32xbf16>, vector<128x128xf32> -> vector<128x128xf32>
    %c0_3 = arith.constant 0 : index
    %c0_4 = arith.constant 0 : index
    %4 = vector.load %arg3[%c0_3, %c0_4] : memref<128x1xf32, #tpu.memory_space<vmem>>, vector<128x1xf32>
    %5 = vector.broadcast %4 : vector<128x1xf32> to vector<128x128xf32>
    %6 = arith.addf %3, %5 : vector<128x128xf32>
    %cst_5 = arith.constant 0.000000e+00 : f32
    %7 = vector.broadcast %cst_5 : f32 to vector<128x128xf32>
    %8 = arith.maximumf %6, %7 : vector<128x128xf32>
    %c0_6 = arith.constant 0 : index
    %c0_7 = arith.constant 0 : index
    %9 = vector.load %arg4[%c0_6, %c0_7] : memref<16x128xbf16, #tpu.memory_space<vmem>>, vector<16x128xbf16>
    %10 = arith.truncf %8 : vector<128x128xf32> to vector<128x128xbf16>
    %cst_8 = arith.constant dense<0.000000e+00> : vector<16x128xf32>
    %11 = tpu.matmul %9, %10, %cst_8 {dimension_numbers = #tpu.dot_dimension_numbers<[1], [0], [0], [1], [0, 0, 1, 1], [], []>} : vector<16x128xbf16>, vector<128x128xbf16>, vector<16x128xf32> -> vector<16x128xf32>
    %c0_9 = arith.constant 0 : index
    %c0_10 = arith.constant 0 : index
    %12 = vector.load %arg5[%c0_9, %c0_10] : memref<16x1xf32, #tpu.memory_space<vmem>>, vector<16x1xf32>
    %13 = vector.broadcast %12 : vector<16x1xf32> to vector<16x128xf32>
    %14 = arith.addf %11, %13 : vector<16x128xf32>
    %cst_11 = arith.constant 0.000000e+00 : f32
    %15 = vector.broadcast %cst_11 : f32 to vector<16x128xf32>
    %16 = arith.maximumf %14, %15 : vector<16x128xf32>
    %c0_12 = arith.constant 0 : index
    %c0_13 = arith.constant 0 : index
    %17 = vector.load %arg6[%c0_12, %c0_13] : memref<2x16xbf16, #tpu.memory_space<vmem>>, vector<2x16xbf16>
    %18 = arith.truncf %16 : vector<16x128xf32> to vector<16x128xbf16>
    %cst_14 = arith.constant dense<0.000000e+00> : vector<2x128xf32>
    %19 = tpu.matmul %17, %18, %cst_14 {dimension_numbers = #tpu.dot_dimension_numbers<[1], [0], [0], [1], [0, 0, 1, 1], [], []>} : vector<2x16xbf16>, vector<16x128xbf16>, vector<2x128xf32> -> vector<2x128xf32>
    %c0_15 = arith.constant 0 : index
    %c0_16 = arith.constant 0 : index
    %20 = vector.load %arg7[%c0_15, %c0_16] : memref<2x1xf32, #tpu.memory_space<vmem>>, vector<2x1xf32>
    %21 = vector.broadcast %20 : vector<2x1xf32> to vector<2x128xf32>
    %22 = arith.addf %19, %21 : vector<2x128xf32>
    %23 = math.tanh %22 : vector<2x128xf32>
    %c0_17 = arith.constant 0 : index
    %c0_18 = arith.constant 0 : index
    %24 = vector.load %arg8[%c0_17, %c0_18] : memref<2x128xf32, #tpu.memory_space<vmem>>, vector<2x128xf32>
    tpu.vector_store %arg8[%c0_17, %c0_18], %23 {strides = array<i32>} : memref<2x128xf32, #tpu.memory_space<vmem>>, vector<2x128xf32>,
    return
  }
  func.func @transform_0(%arg0: i32) -> (i32, i32) {
    %c0_i32 = arith.constant 0 : i32
    %c0_i32_0 = arith.constant 0 : i32
    return %arg0, %c0_i32 : i32, i32
  }
  func.func @transform_1(%arg0: i32) -> (i32, i32) {
    %c0_i32 = arith.constant 0 : i32
    %c0_i32_0 = arith.constant 0 : i32
    %c0_i32_1 = arith.constant 0 : i32
    return %c0_i32, %c0_i32_0 : i32, i32
  }
  func.func @transform_2(%arg0: i32) -> (i32, i32) {
    %c0_i32 = arith.constant 0 : i32
    %c0_i32_0 = arith.constant 0 : i32
    %c0_i32_1 = arith.constant 0 : i32
    return %c0_i32, %c0_i32_0 : i32, i32
  }
  func.func @transform_3(%arg0: i32) -> (i32, i32) {
    %c0_i32 = arith.constant 0 : i32
    %c0_i32_0 = arith.constant 0 : i32
    %c0_i32_1 = arith.constant 0 : i32
    return %c0_i32, %c0_i32_0 : i32, i32
  }
  func.func @transform_4(%arg0: i32) -> (i32, i32) {
    %c0_i32 = arith.constant 0 : i32
    %c0_i32_0 = arith.constant 0 : i32
    %c0_i32_1 = arith.constant 0 : i32
    return %c0_i32, %c0_i32_0 : i32, i32
  }
  func.func @transform_5(%arg0: i32) -> (i32, i32) {
    %c0_i32 = arith.constant 0 : i32
    %c0_i32_0 = arith.constant 0 : i32
    %c0_i32_1 = arith.constant 0 : i32
    return %c0_i32, %c0_i32_0 : i32, i32
  }
  func.func @transform_6(%arg0: i32) -> (i32, i32) {
    %c0_i32 = arith.constant 0 : i32
    %c0_i32_0 = arith.constant 0 : i32
    %c0_i32_1 = arith.constant 0 : i32
    return %c0_i32, %c0_i32_0 : i32, i32
  }
  func.func @transform_7(%arg0: i32) -> (i32, i32) {
    %c0_i32 = arith.constant 0 : i32
    %c0_i32_0 = arith.constant 0 : i32
    return %c0_i32, %arg0 : i32, i32
  }
}

</mosaic_0001>

<bundles_post_ra>
// kernel: tpu_custom_call.1
= control target key start
LH: loop header
LB: loop body
LE: loop exit
PB: predicated region body
PF: predicated region fallthrough
CT: control target
= control target key end

     0   :  { %vm204_vm0 = vcmask 261120   ;;  %v655_v5 = vmov 0   ;;  %s883_s0 = inlined_call_operand.vmem [shape: f32[8,32], index: 0, kind: input, shape index: {}]   ;;  %s884_s1 = inlined_call_operand.vmem [shape: bf16[128,32], index: 1, kind: input, shape index: {}]   ;;  %s885_s2 = inlined_call_operand.vmem [shape: f32[128,1], index: 2, kind: input, shape index: {}]   ;;  %s886_s3 = inlined_call_operand.vmem [shape: bf16[16,128], index: 3, kind: input, shape index: {}]   ;;  %s887_s4 = inlined_call_operand.vmem [shape: f32[16,1], index: 4, kind: input, shape index: {}]   ;;  %s888_s5 = inlined_call_operand.vmem [shape: bf16[2,16], index: 5, kind: input, shape index: {}]   ;;  %s889_s6 = inlined_call_operand.vmem [shape: f32[2,1], index: 6, kind: input, shape index: {}]   ;;  %s890_s7 = inlined_call_operand.hbm [shape: f32[2,8], index: 7, kind: output, shape index: {}]  }
   0x1   :  { %v42_v0 = vld [vmem:[%s883_s0 + $0x70] sm:$0xff]  ;;  %v43_v1 = vld [vmem:[%s883_s0 + $0x78] sm:$0xff]  ;;  %v40_v2 = vld [vmem:[%s883_s0 + $0x60] sm:$0xff]  ;;  %620 = vset.pattern.permute.xlu0 %v655_v5  ;;  %621 = vset.pattern.permute.xlu1 %v655_v5 }
   0x2   :  { %v51_v3 = vpack.c.bf16 %v43_v1, %v42_v0  ;;  %v41_v4 = vld [vmem:[%s883_s0 + $0x68] sm:$0xff]  ;;  %v38_v8 = vld [vmem:[%s883_s0 + $0x50] sm:$0xff]  ;;  %v39_v9 = vld [vmem:[%s883_s0 + $0x58] sm:$0xff] }
   0x3   :  { %v50_v6 = vpack.c.bf16 %v41_v4, %v40_v2  ;;  %v622_v10 = vld [vmem:[%s884_s1] sm:$0xff]   ;;  %v49_v12 = vpack.c.bf16 %v39_v9, %v38_v8  ;;  %v82_v13 = vld [vmem:[%s885_s2 + $0x70] sm:$0xff]  ;;  %v37_v15 = vld [vmem:[%s883_s0 + $0x48] sm:$0xff] }
   0x4   :  { %608 = vmatprep.subr.msk.bf16.mxu0 %vm204_vm0, %v51_v3  ;;  %v251_v7 = vsel %vm204_vm0, %v51_v3, 0  ;;  %566 = vmatprep.mubr.msk.bf16.mxu0 %vm204_vm0, %v622_v10  ;;  %v36_v14 = vld [vmem:[%s883_s0 + $0x40] sm:$0xff]  ;;  %v83_v17 = vld [vmem:[%s885_s2 + $0x78] sm:$0xff]  ;;  %v81_v18 = vld [vmem:[%s885_s2 + $0x68] sm:$0xff] }
   0x5   :  { %551 = vmatpush3.bf16.xpose.msra.mxu0 %v251_v7  ;;  %v248_v11 = vsel %vm204_vm0, %v50_v6, 0  ;;  %156 = vperm.xlu0 %620, %v82_v13   ;;  %v80_v16 = vld [vmem:[%s885_s2 + $0x60] sm:$0xff]  ;;  %v245_v19 = vsel %vm204_vm0, %v49_v12, 0  ;;  %v48_v20 = vpack.c.bf16 %v37_v15, %v36_v14  ;;  %v78_v21 = vld [vmem:[%s885_s2 + $0x50] sm:$0xff]  ;;  %v79_v22 = vld [vmem:[%s885_s2 + $0x58] sm:$0xff] }
   0x6   :  { %609 = vmatprep.subr.msk.bf16.mxu0 %vm204_vm0, %v50_v6  ;;  %146 = vperm.xlu1 %621, %v80_v16  }
   0x9   :  { %161 = vperm.xlu0 %620, %v83_v17  }
   0xa   :  { %151 = vperm.xlu1 %621, %v81_v18  }
   0xd   :  { %553 = vmatpush3.bf16.xpose.msra.mxu0 %v248_v11 }
   0xe   :  { %610 = vmatprep.subr.msk.bf16.mxu0 %vm204_vm0, %v49_v12 }
  0x15   :  { %555 = vmatpush3.bf16.xpose.msra.mxu0 %v245_v19 }
  0x16   :  { %12 = vsyncpa [#allocation3], 0  ;;  %611 = vmatprep.subr.msk.bf16.mxu0 %vm204_vm0, %v48_v20  ;;  %v34_v23 = vld [vmem:[%s883_s0 + $0x30] sm:$0xff]  ;;  %v35_v24 = vld [vmem:[%s883_s0 + $0x38] sm:$0xff]  ;;  %136 = vperm.xlu0 %620, %v78_v21   ;;  %v242_v27 = vsel %vm204_vm0, %v48_v20, 0  ;;  %v656_v60 = vmov 0.0  }
  0x17   :  { %141 = vperm.xlu1 %621, %v79_v22   ;;  %v76_v25 = vld [vmem:[%s885_s2 + $0x40] sm:$0xff]  ;;  %v77_v26 = vld [vmem:[%s885_s2 + $0x48] sm:$0xff]  ;;  %v47_v28 = vpack.c.bf16 %v35_v24, %v34_v23  ;;  %v74_v29 = vld [vmem:[%s885_s2 + $0x30] sm:$0xff]  ;;  %582 = vmatprep.subr.bf16.mxu1 %v656_v60  ;;  %vm657_vm1 = vmmov 0   ;;  %vm445_vm2 = vcmask 130048   ;;  %s658_s16 = smov [#allocation2]  }
  0x18   :  { %v75_v30 = vld [vmem:[%s885_s2 + $0x38] sm:$0xff]  ;;  %v32_v31 = vld [vmem:[%s883_s0 + $0x20] sm:$0xff]  ;;  %v33_v32 = vld [vmem:[%s883_s0 + $0x28] sm:$0xff]  ;;  %598 = vmatprep.mubr.msk.bf16.mxu1 %vm657_vm1, %v656_v60  ;;  %s497_s17 = sshll.u32 %s658_s16, 4  ;;  %s498_s17 = int_to_ptr.vmem [resolvable:$true] %s497_s17 }
  0x19   :  { %v72_v33 = vld [vmem:[%s885_s2 + $0x20] sm:$0xff]  ;;  %v73_v34 = vld [vmem:[%s885_s2 + $0x28] sm:$0xff]  ;;  %v239_v35 = vsel %vm204_vm0, %v47_v28, 0  ;;  %v46_v36 = vpack.c.bf16 %v33_v32, %v32_v31  ;;  %v70_v37 = vld [vmem:[%s885_s2 + $0x10] sm:$0xff]  ;;  %s633_s18 = scalar_lea.vmem %s498_s17, 32  ;;  %p638_p1 = scmp.lt.s32.totalorder %s498_s17, %s498_s17 }
  0x1a   :  { %126 = vperm.xlu0 %620, %v76_v25   ;;  %v71_v38 = vld [vmem:[%s885_s2 + $0x18] sm:$0xff]  ;;  %v30_v39 = vld [vmem:[%s883_s0 + $0x10] sm:$0xff]  ;;  %v68_v41 = vld [vmem:[%s885_s2] sm:$0xff]  ;;  %p634_p0 = scmp.ne.s32.totalorder %s498_s17, %s633_s18  ;;  %p639_p2 = scmp.lt.s32.totalorder %s633_s18, %s633_s18 }
  0x1b   :  { %131 = vperm.xlu1 %621, %v77_v26   ;;  %v31_v40 = vld [vmem:[%s883_s0 + $0x18] sm:$0xff]  ;;  %v69_v42 = vld [vmem:[%s885_s2 + $0x8] sm:$0xff]  ;;  %v236_v43 = vsel %vm204_vm0, %v46_v36, 0  ;;  %v376_v45 = vld [vmem:[%s887_s4] sm:$0xff] }
  0x1c   :  { %v45_v44 = vpack.c.bf16 %v31_v40, %v30_v39  ;;  %v377_v46 = vld [vmem:[%s887_s4 + $0x8] sm:$0xff]  ;;  %v28_v47 = vld [vmem:[%s883_s0] sm:$0xff]  ;;  %v624_v54 = vld [vmem:[%s884_s1 + $0x10] sm:$0xff]   ;;  %p640_p3 = por %p639_p2, %p638_p1 }
  0x1d   :  { %557 = vmatpush3.bf16.xpose.msra.mxu0 %v242_v27  ;;  %v29_v48 = vld [vmem:[%s883_s0 + $0x8] sm:$0xff]  ;;  %v439_v49 = vld [vmem:[%s889_s6] sm:$0x3]  ;;  %v625_v55 = vld [vmem:[%s884_s1 + $0x18] sm:$0xff]  }
  0x1e   :  { %612 = vmatprep.subr.msk.bf16.mxu0 %vm204_vm0, %v47_v28  ;;  %116 = vperm.xlu0 %620, %v74_v29   ;;  %v233_v50 = vsel %vm204_vm0, %v45_v44, 0  ;;  %v44_v51 = vpack.c.bf16 %v29_v48, %v28_v47  ;;  %v623_v53 = vld [vmem:[%s884_s1 + $0x8] sm:$0xff]   ;;  %v626_v56 = vld [vmem:[%s884_s1 + $0x20] sm:$0xff]   ;;  %v628_v58 = vld [vmem:[%s884_s1 + $0x30] sm:$0xff]   ;;  %p641_p4 = pnand %p640_p3, %p634_p0 }
  0x1f   :  { %121 = vperm.xlu1 %621, %v75_v30   ;;  %v627_v57 = vld [vmem:[%s884_s1 + $0x28] sm:$0xff]   ;;  %v629_v59 = vld [vmem:[%s884_s1 + $0x38] sm:$0xff]  }
  0x20   :  { %v230_v52 = vsel %vm204_vm0, %v44_v51, 0 }
  0x22   :  { %106 = vperm.xlu0 %620, %v72_v33  }
  0x23   :  { %111 = vperm.xlu1 %621, %v73_v34  }
  0x25   :  { %559 = vmatpush3.bf16.xpose.msra.mxu0 %v239_v35 }
  0x26   :  { %613 = vmatprep.subr.msk.bf16.mxu0 %vm204_vm0, %v46_v36  ;;  %96 = vperm.xlu0 %620, %v70_v37  }
  0x27   :  { %101 = vperm.xlu1 %621, %v71_v38  }
  0x2a   :  { %86 = vperm.xlu0 %620, %v68_v41  }
  0x2b   :  { %91 = vperm.xlu1 %621, %v69_v42  }
  0x2d   :  { %561 = vmatpush3.bf16.xpose.msra.mxu0 %v236_v43 }
  0x2e   :  { %614 = vmatprep.subr.msk.bf16.mxu0 %vm204_vm0, %v45_v44  ;;  %380 = vperm.xlu0 %620, %v376_v45  }
  0x2f   :  { %385 = vperm.xlu1 %621, %v377_v46  }
  0x32   :  { %442 = vperm.xlu0 %620, %v439_v49  }
  0x35   :  { %563 = vmatpush3.bf16.xpose.msra.mxu0 %v233_v50 }
  0x36   :  { %615 = vmatprep.subr.msk.bf16.mxu0 %vm204_vm0, %v44_v51 }
  0x3d   :  { %565 = vmatpush3.bf16.xpose.msra.mxu0 %v230_v52 }
  0x44   :  { %567 = vmatmul.mubr.msk.bf16.vlgmr.msra.gmra.mxu0 %vm204_vm0, %v623_v53 }
  0x45   :  { %570 = vmatprep.mubr.msk.bf16.mxu0 %vm204_vm0, %v624_v54 }
  0x4c   :  { %571 = vmatmul.mubr.msk.bf16.gmra.mxu0 %vm204_vm0, %v625_v55 }
  0x4d   :  { %574 = vmatprep.mubr.msk.bf16.mxu0 %vm204_vm0, %v626_v56 }
  0x54   :  { %575 = vmatmul.mubr.msk.bf16.gmra.mxu0 %vm204_vm0, %v627_v57 }
  0x55   :  { %578 = vmatprep.mubr.msk.bf16.mxu0 %vm204_vm0, %v628_v58 }
  0x5c   :  { %579 = vmatmul.mubr.msk.bf16.gmra.mxu0 %vm204_vm0, %v629_v59 }
  0x80   :  { %v157_v3 = vpop.permute.xlu0 %156 }
  0x81   :  { %v147_v1 = vpop.permute.xlu1 %146 }
  0x84   :  { %v162_v8 = vpop.permute.xlu0 %161 }
  0x85   :  { %v152_v6 = vpop.permute.xlu1 %151 }
  0x91   :  { %v137_v13 = vpop.permute.xlu0 %136 }
  0x92   :  { %v142_v11 = vpop.permute.xlu1 %141 }
  0x95   :  { %v127_v19 = vpop.permute.xlu0 %126 }
  0x96   :  { %v132_v16 = vpop.permute.xlu1 %131 }
  0x99   :  { %v117_v31 = vpop.permute.xlu0 %116 }
  0x9a   :  { %v122_v27 = vpop.permute.xlu1 %121 }
  0x9d   :  { %v107_v40 = vpop.permute.xlu0 %106 }
  0x9e   :  { %v112_v37 = vpop.permute.xlu1 %111 }
  0xa1   :  { %v97_v50 = vpop.permute.xlu0 %96 }
  0xa2   :  { %v102_v46 = vpop.permute.xlu1 %101 }
  0xa5   :  { %v87_v59 = vpop.permute.xlu0 %86 }
  0xa6   :  { %v92_v56 = vpop.permute.xlu1 %91 }
 0x104   :  { %v855_v61 = vpop.f32.mrf.mxu0 }
 0x105   :  { %v296_v57 = vadd.f32 %v855_v61, %v97_v50 }
 0x106   :  { %v857_v62 = vpop.f32.mrf.mxu0 }
 0x108   :  { %v569_v63 = vpop.f32.mrf.mxu0 }
 0x109   :  { %v299_v53 = vadd.f32 %v569_v63, %v102_v46 }
 0x10a   :  { %v859_v0 = vpop.f32.mrf.mxu0 }
 0x10c   :  { %v572_v2 = vpop.f32.mrf.mxu0 }
 0x10d   :  { %v312_v44 = vadd.f32 %v572_v2, %v117_v31  ;;  %v291_v2 = vadd.f32 %v859_v0, %v92_v56  ;;  %v381_v0 = vpop.permute.xlu0 %380 }
 0x10e   :  { %v303_v4 = vpop.f32.mrf.mxu0 }
 0x10f   :  { %v356_v51 = vmax.f32 %v312_v44, 0.0  ;;  %v304_v52 = vadd.f32 %v303_v4, %v107_v40  ;;  %v288_v4 = vadd.f32 %v857_v62, %v87_v59 }
 0x110   :  { %v573_v5 = vpop.f32.mrf.mxu0 }
 0x111   :  { %v315_v41 = vadd.f32 %v573_v5, %v122_v27  ;;  %v354_v58 = vmax.f32 %v304_v52, 0.0  ;;  %v352_v5 = vmax.f32 %v296_v57, 0.0 }
 0x112   :  { %v306_v7 = vpop.f32.mrf.mxu0 }
 0x113   :  { %v357_v47 = vmax.f32 %v315_v41, 0.0  ;;  %v307_v48 = vadd.f32 %v306_v7, %v112_v37  ;;  %v350_v7 = vmax.f32 %v288_v4, 0.0 }
 0x114   :  { %v576_v9 = vpop.f32.mrf.mxu0 }
 0x115   :  { %v328_v32 = vadd.f32 %v576_v9, %v137_v13  ;;  %v371_v54 = vpack.c.bf16 %v357_v47, %v356_v51  ;;  %v355_v55 = vmax.f32 %v307_v48, 0.0 }
 0x116   :  { %v319_v10 = vpop.f32.mrf.mxu0 }
 0x117   :  { %v360_v38 = vmax.f32 %v328_v32, 0.0  ;;  %v320_v39 = vadd.f32 %v319_v10, %v127_v19  ;;  %v443_v19 = vpop.permute.xlu0 %442 }
 0x118   :  { %v577_v12 = vpop.f32.mrf.mxu0 }
 0x119   :  { %v331_v28 = vadd.f32 %v577_v12, %v142_v11  ;;  %v358_v45 = vmax.f32 %v320_v39, 0.0  ;;  %v386_v11 = vpop.permute.xlu1 %385 }
 0x11a   :  { %v322_v14 = vpop.f32.mrf.mxu0 }
 0x11b   :  { %v361_v34 = vmax.f32 %v331_v28, 0.0  ;;  %v323_v35 = vadd.f32 %v322_v14, %v132_v16 }
 0x11c   :  { %v580_v15 = vpop.f32.mrf.mxu0 }
 0x11d   :  { %v344_v18 = vadd.f32 %v580_v15, %v157_v3  ;;  %v373_v42 = vpack.c.bf16 %v361_v34, %v360_v38  ;;  %v359_v43 = vmax.f32 %v323_v35, 0.0  ;;  %v370_v3 = vpack.c.bf16 %v355_v55, %v354_v58 }
 0x11e   :  { %v335_v17 = vpop.f32.mrf.mxu0 }
 0x11f   :  { %v364_v23 = vmax.f32 %v344_v18, 0.0  ;;  %v336_v24 = vadd.f32 %v335_v17, %v147_v1  ;;  %v372_v49 = vpack.c.bf16 %v359_v43, %v358_v45  ;;  %v353_v1 = vmax.f32 %v299_v53, 0.0  ;;  %v437_v18 = vld [vmem:[%s888_s5] sm:$0x1] }
 0x120   :  { %v581_v20 = vpop.f32.mrf.mxu0 }
 0x121   :  { %v347_v21 = vadd.f32 %v581_v20, %v162_v8  ;;  %v362_v33 = vmax.f32 %v336_v24, 0.0  ;;  %v369_v63 = vpack.c.bf16 %v353_v1, %v352_v5  ;;  %v630_v8 = vld [vmem:[%s886_s3] sm:$0xff]  }
 0x122   :  { %v338_v22 = vpop.f32.mrf.mxu0 }
 0x123   :  { %v365_v25 = vmax.f32 %v347_v21, 0.0  ;;  %v339_v26 = vadd.f32 %v338_v22, %v152_v6  ;;  %v351_v6 = vmax.f32 %v291_v2, 0.0 }
 0x125   :  { %v363_v29 = vmax.f32 %v339_v26, 0.0  ;;  %v375_v30 = vpack.c.bf16 %v365_v25, %v364_v23  ;;  %v368_v61 = vpack.c.bf16 %v351_v6, %v350_v7 }
 0x127   :  { %583 = vmatpush3.bf16.msra.mxu1 %v375_v30  ;;  %v374_v36 = vpack.c.bf16 %v363_v29, %v362_v33 }
 0x128   :  { %584 = vmatprep.subr.bf16.mxu1 %v656_v60 }
 0x12b   :  { %585 = vmatpush3.bf16.msra.mxu1 %v374_v36 }
 0x12c   :  { %586 = vmatprep.subr.bf16.mxu1 %v656_v60 }
 0x12f   :  { %587 = vmatpush3.bf16.msra.mxu1 %v373_v42 }
 0x130   :  { %588 = vmatprep.subr.bf16.mxu1 %v656_v60 }
 0x133   :  { %589 = vmatpush3.bf16.msra.mxu1 %v372_v49 }
 0x134   :  { %590 = vmatprep.subr.bf16.mxu1 %v656_v60 }
 0x137   :  { %591 = vmatpush3.bf16.msra.mxu1 %v371_v54 }
 0x138   :  { %592 = vmatprep.subr.bf16.mxu1 %v656_v60 }
 0x13b   :  { %593 = vmatpush3.bf16.msra.mxu1 %v370_v3 }
 0x13c   :  { %594 = vmatprep.subr.bf16.mxu1 %v656_v60 }
 0x13f   :  { %595 = vmatpush3.bf16.msra.mxu1 %v369_v63 }
 0x140   :  { %596 = vmatprep.subr.bf16.mxu1 %v656_v60 }
 0x143   :  { %597 = vmatpush3.bf16.msra.mxu1 %v368_v61 }
 0x144   :  { %602 = vmatprep.subr.bf16.mxu1 %v656_v60 }
 0x146   :  { %599 = vmatmul.mubr.bf16.vlgmr.msra.gmra.mxu1 %v630_v8 }
 0x147   :  { %604 = vmatprep.mubr.msk.bf16.mxu1 %vm657_vm1, %v656_v60 }
 0x206   :  { %v428_v62 = vpop.f32.mrf.mxu1 }
 0x207   :  { %v429_v10 = vadd.f32 %v428_v62, %v381_v0 }
 0x208   :  { %v600_v9 = vpop.f32.mrf.mxu1 }
 0x209   :  { %v435_v15 = vmax.f32 %v429_v10, 0.0 }
 0x20a   :  { %v431_v12 = vpop.f32.mrf.mxu1 }
 0x20b   :  { %v432_v13 = vadd.f32 %v431_v12, %v386_v11 }
 0x20c   :  { %v601_v14 = vpop.f32.mrf.mxu1 }
 0x20d   :  { %v436_v16 = vmax.f32 %v432_v13, 0.0 }
 0x20f   :  { %v438_v17 = vpack.c.bf16 %v436_v16, %v435_v15 }
 0x211   :  { %603 = vmatpush3.bf16.msra.mxu1 %v438_v17 }
 0x214   :  { %605 = vmatmul.mubr.msk.bf16.vlgmr.msra.gmra.mxu1 %vm445_vm2, %v437_v18 }
 0x2d4   :  { %v483_v60 = vpop.f32.mrf.mxu1 }
 0x2d5   :  { %v484_v20 = vadd.f32 %v483_v60, %v443_v19 }
 0x2d6   :  { %v606_v21 = vpop.f32.mrf.mxu1 }
 0x2d7   :  { %631 = vtanh.f32 %v484_v20 }
 0x2d8   :  { %v486_v22 = vpop.f32.mrf.mxu1 }
 0x2da   :  { %v607_v23 = vpop.f32.mrf.mxu1 }
 0x2e4   :  { %v632_v24 = vpop.eup %631 }
 0x2e5   :  { %490 = vst [vmem:[#allocation2] sm:$0x3] %v632_v24 }
 0x2e6   :  { %644 = shalt.err (!%p641_p4)
}
 0x2e7   :  { %500 = dma.vmem_to_hbm [thread:$0]  %s498_s17, 32, %s890_s7, [#allocation3]  }
 0x2e8   :  { %653 = dma.done.wait [#allocation3], 32  }
 0x2e9   :  { %654 = vsyncadd [#allocation3], 4294967264 }
 0x2ea   :  { %504 = vsyncpa [#allocation3], 1 }

</bundles_post_ra>
